<compile_context>
chip_gen: v5e
topology: v5e:2x2
jax: 0.10.0
libtpu: 0.0.40
codegen_flags: <defaults>
</compile_context>

<pallas_src>
import functools
import math

import jax
import jax.numpy as jnp
from jax import lax
from jax.experimental import pallas as pl
from jax.experimental.pallas import tpu as pltpu


# -----------------------------------------------------------------------------
# Config (mirrors the fields LlamaSelfAttention reads from LlamaConfig)
# -----------------------------------------------------------------------------
N_EMBED = 32
N_Q_HEADS = 4
N_KV_HEADS = 2
HEAD_DIMS = N_EMBED // N_Q_HEADS          # 8
N_KV_GROUPS = N_Q_HEADS // N_KV_HEADS     # 2
ROPE_THETA_BASE = 10000.0
DTYPE = jnp.float32                       # config.default_dtype; use bf16 on v6e/v7x prod


# -----------------------------------------------------------------------------
# One-time (init-time) parameter packing — NOT under jit per forward.
#   * q/k columns permuted to grouped-halves layout (all lo halves, then all
#     hi halves) so rotate-half becomes a single slab-level swap.
#   * 1/sqrt(D) folded into the q columns (exact: everything up to the score
#     matmul is linear in q).
# -----------------------------------------------------------------------------
def prepare_llama_attention_params(wq, wk, wv, wo, *, n_q_heads=N_Q_HEADS,
                                   n_kv_heads=N_KV_HEADS, head_dims=HEAD_DIMS):
    D, Dh = head_dims, head_dims // 2

    def group_halves(w, n_heads):
        lo = [w[:, h * D: h * D + Dh] for h in range(n_heads)]
        hi = [w[:, h * D + Dh: (h + 1) * D] for h in range(n_heads)]
        return jnp.concatenate(lo + hi, axis=1)

    wq_g = group_halves(wq, n_q_heads) * (1.0 / math.sqrt(D))
    wk_g = group_halves(wk, n_kv_heads)
    wqkv = jnp.concatenate([wq_g, wk_g, wv], axis=1)   # [E, (Hq+2*Hkv)*D]
    return {"wqkv": wqkv, "wo": wo}


# -----------------------------------------------------------------------------
# Host-side RoPE tables, pre-tiled to slab width and sign-folded so the kernel
# does a single lane-dense  qk*cos + rot(qk)*sin  pass over q and k together.
#   cos_qk  = [tile(c,Hq), tile(c,Hq) | tile(c,Hkv), tile(c,Hkv)]
#   sin_qk  = [tile(-s,Hq), tile(s,Hq) | tile(-s,Hkv), tile(s,Hkv)]
# -----------------------------------------------------------------------------
def _rope_tables(position_ids, dtype, *, n_q_heads=N_Q_HEADS,
                 n_kv_heads=N_KV_HEADS, head_dims=HEAD_DIMS,
                 base=ROPE_THETA_BASE):
    Dh = head_dims // 2
    inv_freq = 1.0 / (base ** (jnp.arange(0, head_dims, 2,
                                          dtype=jnp.float32) / head_dims))
    half = position_ids.astype(jnp.float32)[:, :, None] * inv_freq[None, None, :]
    c, s = jnp.cos(half), jnp.sin(half)                 # [B, S, Dh]

    def tiled(lo, hi, n_heads):
        return jnp.concatenate([jnp.tile(lo, (1, 1, n_heads)),
                                jnp.tile(hi, (1, 1, n_heads))], axis=-1)

    cos_qk = jnp.concatenate([tiled(c, c, n_q_heads),
                              tiled(c, c, n_kv_heads)], axis=-1)
    sin_qk = jnp.concatenate([tiled(-s, s, n_q_heads),
                              tiled(-s, s, n_kv_heads)], axis=-1)
    return cos_qk.astype(dtype), sin_qk.astype(dtype)


# -----------------------------------------------------------------------------
# Fused Pallas kernel
# -----------------------------------------------------------------------------
def _fused_attn_kernel(x_ref, wqkv_ref, wo_ref, cos_ref, sin_ref, mask_ref,
                       o_ref, *, n_q_heads, n_kv_heads, head_dims):
    Hq, Hkv, D = n_q_heads, n_kv_heads, head_dims
    groups = Hq // Hkv
    Dh = D // 2
    QD, KD = Hq * D, Hkv * D
    QDh, KDh = QD // 2, KD // 2

    x = x_ref[...]                                       # [S, E]
    mask = mask_ref[...]                                 # [S, S] additive
    wo = wo_ref[...]                                     # [Hq*D, E]

    # Single fused q|k|v projection: [S, E] @ [E, QD + 2*KD].  Operands stay in
    # the param/activation dtype (bf16 params on v6e/v7x hit the fast MXU path),
    # accumulation is f32 via preferred_element_type.
    qkv = jnp.dot(x, wqkv_ref[...], preferred_element_type=jnp.float32)

    # ---- RoPE: one lane-dense pass over the combined q|k slab --------------
    qk = qkv[:, :QD + KD]
    # Grouped-halves layout => rotate_half of every head == swap the two big
    # halves of the q slab / of the k slab (sign folded into sin table).
    # TODO(synk): use pltpu.roll per slab at real D=128 (128-lane aligned).
    rot = jnp.concatenate(
        [qk[:, QDh:QD], qk[:, :QDh],                      # q slab: hi | lo
         qk[:, QD + KDh:QD + KD], qk[:, QD:QD + KDh]],    # k slab: hi | lo
        axis=1)
    qk = qk * cos_ref[...] + rot * sin_ref[...]

    # ---- GQA attention with per-head output-projection accumulation --------
    out_acc = jnp.zeros(o_ref.shape, jnp.float32)
    dnums = (((1,), (1,)), ((), ()))                      # q @ k^T, no k.T mat.
    for g in range(Hkv):
        k_lo = qk[:, QD + g * Dh: QD + (g + 1) * Dh]
        k_hi = qk[:, QD + KDh + g * Dh: QD + KDh + (g + 1) * Dh]
        v_g = qkv[:, QD + KD + g * D: QD + KD + (g + 1) * D]
        for j in range(groups):
            h = g * groups + j
            q_lo = qk[:, h * Dh: (h + 1) * Dh]
            q_hi = qk[:, QDh + h * Dh: QDh + (h + 1) * Dh]
            # scale already folded into wq columns at init time.
            s = (lax.dot_general(q_lo, k_lo, dnums,
                                 preferred_element_type=jnp.float32)
                 + lax.dot_general(q_hi, k_hi, dnums,
                                   preferred_element_type=jnp.float32))
            s = s + mask
            s = s - jnp.max(s, axis=-1, keepdims=True)
            p = jnp.exp(s)
            p = p * pl.reciprocal(jnp.sum(p, axis=-1, keepdims=True),
                                  approx=True)
            pv = jnp.dot(p.astype(v_g.dtype), v_g,
                         preferred_element_type=jnp.float32)
            out_acc = out_acc + jnp.dot(pv.astype(wo.dtype),
                                        wo[h * D:(h + 1) * D, :],
                                        preferred_element_type=jnp.float32)

    o_ref[...] = out_acc.astype(o_ref.dtype)


# -----------------------------------------------------------------------------
# Forward pass (kv_cache=None behaviour of LlamaSelfAttention.forward)
# -----------------------------------------------------------------------------
def llama_self_attention(hidden_state, attention_mask, position_ids, params):
    B, S, E = hidden_state.shape
    Hq, Hkv, D = N_Q_HEADS, N_KV_HEADS, HEAD_DIMS
    QD, KD = Hq * D, Hkv * D
    QKV = QD + 2 * KD

    assert attention_mask.shape[-2:] == (S, S)
    assert attention_mask.shape[1] == 1, "per-head attention masks unsupported"

    cos_qk, sin_qk = _rope_tables(position_ids, hidden_state.dtype)

    # Batch-invariant mask ([1,1,S,S]) -> constant block index -> DMA'd once.
    if attention_mask.shape[0] == 1:
        mask_idx = lambda b: (0, 0, 0, 0)
    else:
        mask_idx = lambda b: (b, 0, 0, 0)

    kernel = functools.partial(_fused_attn_kernel, n_q_heads=Hq,
                               n_kv_heads=Hkv, head_dims=D)

    return pl.pallas_call(
        kernel,
        out_shape=jax.ShapeDtypeStruct((B, S, E), hidden_state.dtype),
        grid=(B,),
        in_specs=[
            pl.BlockSpec((None, S, E), lambda b: (b, 0, 0)),           # x
            pl.BlockSpec((E, QKV), lambda b: (0, 0)),                  # wqkv
            pl.BlockSpec((QD, E), lambda b: (0, 0)),                   # wo
            pl.BlockSpec((None, S, QD + KD), lambda b: (b, 0, 0)),     # cos
            pl.BlockSpec((None, S, QD + KD), lambda b: (b, 0, 0)),     # sin
            pl.BlockSpec((None, None, S, S), mask_idx),                # mask
        ],
        out_specs=pl.BlockSpec((None, S, E), lambda b: (b, 0, 0)),
        compiler_params=pltpu.CompilerParams(
            dimension_semantics=("parallel",)),
    )(hidden_state, params["wqkv"], params["wo"], cos_qk, sin_qk,
      attention_mask)


# -----------------------------------------------------------------------------
# Pure-JAX reference (uses the ORIGINAL, un-permuted weights)
# -----------------------------------------------------------------------------
def _reference(hidden_state, attention_mask, position_ids, raw):
    B, S, E = hidden_state.shape
    Hq, Hkv, D = N_Q_HEADS, N_KV_HEADS, HEAD_DIMS
    x2d = hidden_state.reshape(B * S, E)
    q = (x2d @ raw["wq"]).reshape(B, S, Hq, D).transpose(0, 2, 1, 3)
    k = (x2d @ raw["wk"]).reshape(B, S, Hkv, D).transpose(0, 2, 1, 3)
    v = (x2d @ raw["wv"]).reshape(B, S, Hkv, D).transpose(0, 2, 1, 3)

    inv_freq = 1.0 / (ROPE_THETA_BASE **
                      (jnp.arange(0, D, 2, dtype=jnp.float32) / D))
    m_theta = position_ids.astype(jnp.float32)[:, :, None] * inv_freq[None, None, :]
    m_theta = jnp.concatenate([m_theta, m_theta], axis=-1)
    cos, sin = jnp.cos(m_theta)[:, None], jnp.sin(m_theta)[:, None]

    def rot(t):
        return jnp.concatenate([-t[..., D // 2:], t[..., :D // 2]], axis=-1)

    q = q * cos + rot(q) * sin
    k = k * cos + rot(k) * sin
    k = jnp.repeat(k, N_KV_GROUPS, axis=1)
    v = jnp.repeat(v, N_KV_GROUPS, axis=1)
    scores = jnp.einsum("bhqd,bhkd->bhqk", q, k) / math.sqrt(D) + attention_mask
    p = jax.nn.softmax(scores, axis=-1)
    o = jnp.einsum("bhqk,bhkd->bhqd", p, v)
    o = o.transpose(0, 2, 1, 3).reshape(B * S, Hq * D)
    return (o @ raw["wo"]).reshape(B, S, E)


# -----------------------------------------------------------------------------
# Main
# -----------------------------------------------------------------------------
if __name__ == "__main__":
    B, S = 2, 8

    key = jax.random.PRNGKey(0)
    k_x, k_q, k_k, k_v, k_o = jax.random.split(key, 5)

    # Raw nn.Linear-equivalent weights ([in, out] layout, no bias).
    raw = {
        "wq": (jax.random.normal(k_q, (N_EMBED, N_Q_HEADS * HEAD_DIMS)) * 0.02).astype(DTYPE),
        "wk": (jax.random.normal(k_k, (N_EMBED, N_KV_HEADS * HEAD_DIMS)) * 0.02).astype(DTYPE),
        "wv": (jax.random.normal(k_v, (N_EMBED, N_KV_HEADS * HEAD_DIMS)) * 0.02).astype(DTYPE),
        "wo": (jax.random.normal(k_o, (N_EMBED, N_EMBED)) * 0.02).astype(DTYPE),
    }
    # One-time packing (outside jit; not on the per-forward critical path).
    params = prepare_llama_attention_params(raw["wq"], raw["wk"], raw["wv"], raw["wo"])

    hidden_state = jax.random.normal(k_x, (B, S, N_EMBED)).astype(DTYPE)
    position_ids = jnp.broadcast_to(jnp.arange(S, dtype=jnp.int32)[None, :], (B, S))

    # Batch-invariant causal additive mask [1, 1, S, S] (broadcastable, like
    # the mask handed to torch SDPA): 0 where allowed, -1e9 where masked.
    causal = jnp.tril(jnp.ones((S, S), dtype=bool))
    attention_mask = jnp.where(causal, 0.0, -1e9).astype(DTYPE)[None, None]

    out = jax.jit(llama_self_attention)(hidden_state, attention_mask,
                                        position_ids, params)
    out = jax.block_until_ready(out)

    ref = _reference(hidden_state, attention_mask, position_ids, raw)
    assert out.shape == (B, S, N_EMBED)
    # Tolerance accounts for the EUP approximate reciprocal in the softmax.
    assert jnp.allclose(out, ref, atol=1e-3, rtol=1e-3), \
        float(jnp.max(jnp.abs(out - ref)))

    print("KERNEL_OK")
</pallas_src>

<mosaic_0001>
module attributes {stable_mosaic.version = 11 : i64} {
  func.func @_fused_attn_kernel(%arg0: i32, %arg1: memref<1x8x32xf32, #tpu.memory_space<vmem>>, %arg2: memref<32x64xf32, #tpu.memory_space<vmem>>, %arg3: memref<32x32xf32, #tpu.memory_space<vmem>>, %arg4: memref<1x8x48xf32, #tpu.memory_space<vmem>>, %arg5: memref<1x8x48xf32, #tpu.memory_space<vmem>>, %arg6: memref<1x1x8x8xf32, #tpu.memory_space<vmem>>, %arg7: memref<1x8x32xf32, #tpu.memory_space<vmem>>) attributes {dimension_semantics = [#tpu.dimension_semantics<parallel>], iteration_bounds = array<i64: 2>, scalar_prefetch = 0 : i64, scratch_operands = 0 : i64, tpu.core_type = #tpu.core_type<tc>, window_params = [{transform_indices = @transform_0, window_bounds = array<i64: 1, 8, 32>}, {pipeline_mode = #tpu.pipeline_mode<synchronous>, transform_indices = @transform_1, window_bounds = array<i64: 32, 64>}, {pipeline_mode = #tpu.pipeline_mode<synchronous>, transform_indices = @transform_2, window_bounds = array<i64: 32, 32>}, {transform_indices = @transform_3, window_bounds = array<i64: 1, 8, 48>}, {transform_indices = @transform_4, window_bounds = array<i64: 1, 8, 48>}, {pipeline_mode = #tpu.pipeline_mode<synchronous>, transform_indices = @transform_5, window_bounds = array<i64: 1, 1, 8, 8>}, {transform_indices = @transform_6, window_bounds = array<i64: 1, 8, 32>}]} {
    %c0 = arith.constant 0 : index
    %c0_0 = arith.constant 0 : index
    %c0_1 = arith.constant 0 : index
    %0 = vector.load %arg1[%c0, %c0_0, %c0_1] : memref<1x8x32xf32, #tpu.memory_space<vmem>>, vector<1x8x32xf32>
    %1 = vector.shape_cast %0 : vector<1x8x32xf32> to vector<8x32xf32>
    %c0_2 = arith.constant 0 : index
    %c0_3 = arith.constant 0 : index
    %c0_4 = arith.constant 0 : index
    %c0_5 = arith.constant 0 : index
    %2 = vector.load %arg6[%c0_2, %c0_3, %c0_4, %c0_5] : memref<1x1x8x8xf32, #tpu.memory_space<vmem>>, vector<1x1x8x8xf32>
    %3 = vector.shape_cast %2 : vector<1x1x8x8xf32> to vector<8x8xf32>
    %c0_6 = arith.constant 0 : index
    %c0_7 = arith.constant 0 : index
    %4 = vector.load %arg3[%c0_6, %c0_7] : memref<32x32xf32, #tpu.memory_space<vmem>>, vector<32x32xf32>
    %c0_8 = arith.constant 0 : index
    %c0_9 = arith.constant 0 : index
    %5 = vector.load %arg2[%c0_8, %c0_9] : memref<32x64xf32, #tpu.memory_space<vmem>>, vector<32x64xf32>
    %cst = arith.constant dense<0.000000e+00> : vector<8x64xf32>
    %6 = tpu.matmul %1, %5, %cst {dimension_numbers = #tpu.dot_dimension_numbers<[1], [0], [0], [1], [0, 0, 1, 1], [], []>} : vector<8x32xf32>, vector<32x64xf32>, vector<8x64xf32> -> vector<8x64xf32>
    %7 = vector.extract_strided_slice %6 {offsets = [0, 0], sizes = [8, 48], strides = [1, 1]} : vector<8x64xf32> to vector<8x48xf32>
    %8 = vector.extract_strided_slice %7 {offsets = [0, 16], sizes = [8, 16], strides = [1, 1]} : vector<8x48xf32> to vector<8x16xf32>
    %9 = vector.extract_strided_slice %7 {offsets = [0, 0], sizes = [8, 16], strides = [1, 1]} : vector<8x48xf32> to vector<8x16xf32>
    %10 = vector.extract_strided_slice %7 {offsets = [0, 40], sizes = [8, 8], strides = [1, 1]} : vector<8x48xf32> to vector<8x8xf32>
    %11 = vector.extract_strided_slice %7 {offsets = [0, 32], sizes = [8, 8], strides = [1, 1]} : vector<8x48xf32> to vector<8x8xf32>
    %12 = tpu.concatenate %8, %9, %10, %11 in 1 : vector<8x16xf32>, vector<8x16xf32>, vector<8x8xf32>, vector<8x8xf32> -> vector<8x48xf32>
    %c0_10 = arith.constant 0 : index
    %c0_11 = arith.constant 0 : index
    %c0_12 = arith.constant 0 : index
    %13 = vector.load %arg4[%c0_10, %c0_11, %c0_12] : memref<1x8x48xf32, #tpu.memory_space<vmem>>, vector<1x8x48xf32>
    %14 = vector.shape_cast %13 : vector<1x8x48xf32> to vector<8x48xf32>
    %15 = arith.mulf %7, %14 : vector<8x48xf32>
    %c0_13 = arith.constant 0 : index
    %c0_14 = arith.constant 0 : index
    %c0_15 = arith.constant 0 : index
    %16 = vector.load %arg5[%c0_13, %c0_14, %c0_15] : memref<1x8x48xf32, #tpu.memory_space<vmem>>, vector<1x8x48xf32>
    %17 = vector.shape_cast %16 : vector<1x8x48xf32> to vector<8x48xf32>
    %18 = arith.mulf %12, %17 : vector<8x48xf32>
    %19 = arith.addf %15, %18 : vector<8x48xf32>
    %cst_16 = arith.constant 0.000000e+00 : f32
    %20 = vector.broadcast %cst_16 : f32 to vector<8x32xf32>
    %21 = vector.extract_strided_slice %19 {offsets = [0, 32], sizes = [8, 4], strides = [1, 1]} : vector<8x48xf32> to vector<8x4xf32>
    %22 = vector.extract_strided_slice %19 {offsets = [0, 40], sizes = [8, 4], strides = [1, 1]} : vector<8x48xf32> to vector<8x4xf32>
    %23 = vector.extract_strided_slice %6 {offsets = [0, 48], sizes = [8, 8], strides = [1, 1]} : vector<8x64xf32> to vector<8x8xf32>
    %24 = vector.extract_strided_slice %19 {offsets = [0, 0], sizes = [8, 4], strides = [1, 1]} : vector<8x48xf32> to vector<8x4xf32>
    %25 = vector.extract_strided_slice %19 {offsets = [0, 16], sizes = [8, 4], strides = [1, 1]} : vector<8x48xf32> to vector<8x4xf32>
    %cst_17 = arith.constant dense<0.000000e+00> : vector<8x8xf32>
    %26 = tpu.matmul %24, %21, %cst_17 {dimension_numbers = #tpu.dot_dimension_numbers<[1], [1], [0], [0], [0, 0, 1, 0], [], []>} : vector<8x4xf32>, vector<8x4xf32>, vector<8x8xf32> -> vector<8x8xf32>
    %cst_18 = arith.constant dense<0.000000e+00> : vector<8x8xf32>
    %27 = tpu.matmul %25, %22, %cst_18 {dimension_numbers = #tpu.dot_dimension_numbers<[1], [1], [0], [0], [0, 0, 1, 0], [], []>} : vector<8x4xf32>, vector<8x4xf32>, vector<8x8xf32> -> vector<8x8xf32>
    %28 = arith.addf %26, %27 : vector<8x8xf32>
    %29 = arith.addf %28, %3 : vector<8x8xf32>
    %cst_19 = arith.constant dense<0xFF800000> : vector<8xf32>
    %30 = vector.multi_reduction <maximumf>, %29, %cst_19 [1] : vector<8x8xf32> to vector<8xf32>
    %31 = vector.shape_cast %30 : vector<8xf32> to vector<8x1xf32>
    %32 = vector.broadcast %31 : vector<8x1xf32> to vector<8x8xf32>
    %33 = arith.subf %29, %32 : vector<8x8xf32>
    %34 = math.exp %33 : vector<8x8xf32>
    %cst_20 = arith.constant dense<0.000000e+00> : vector<8xf32>
    %35 = vector.multi_reduction <add>, %34, %cst_20 [1] : vector<8x8xf32> to vector<8xf32>
    %36 = vector.shape_cast %35 : vector<8xf32> to vector<8x1xf32>
    %37 = tpu.reciprocal %36 {approx = true} : vector<8x1xf32> -> vector<8x1xf32>
    %38 = vector.broadcast %37 : vector<8x1xf32> to vector<8x8xf32>
    %39 = arith.mulf %34, %38 : vector<8x8xf32>
    %cst_21 = arith.constant dense<0.000000e+00> : vector<8x8xf32>
    %40 = tpu.matmul %39, %23, %cst_21 {dimension_numbers = #tpu.dot_dimension_numbers<[1], [0], [0], [1], [0, 0, 1, 1], [], []>} : vector<8x8xf32>, vector<8x8xf32>, vector<8x8xf32> -> vector<8x8xf32>
    %41 = vector.extract_strided_slice %4 {offsets = [0, 0], sizes = [8, 32], strides = [1, 1]} : vector<32x32xf32> to vector<8x32xf32>
    %cst_22 = arith.constant dense<0.000000e+00> : vector<8x32xf32>
    %42 = tpu.matmul %40, %41, %cst_22 {dimension_numbers = #tpu.dot_dimension_numbers<[1], [0], [0], [1], [0, 0, 1, 1], [], []>} : vector<8x8xf32>, vector<8x32xf32>, vector<8x32xf32> -> vector<8x32xf32>
    %43 = arith.addf %20, %42 : vector<8x32xf32>
    %44 = vector.extract_strided_slice %19 {offsets = [0, 4], sizes = [8, 4], strides = [1, 1]} : vector<8x48xf32> to vector<8x4xf32>
    %45 = vector.extract_strided_slice %19 {offsets = [0, 20], sizes = [8, 4], strides = [1, 1]} : vector<8x48xf32> to vector<8x4xf32>
    %cst_23 = arith.constant dense<0.000000e+00> : vector<8x8xf32>
    %46 = tpu.matmul %44, %21, %cst_23 {dimension_numbers = #tpu.dot_dimension_numbers<[1], [1], [0], [0], [0, 0, 1, 0], [], []>} : vector<8x4xf32>, vector<8x4xf32>, vector<8x8xf32> -> vector<8x8xf32>
    %cst_24 = arith.constant dense<0.000000e+00> : vector<8x8xf32>
    %47 = tpu.matmul %45, %22, %cst_24 {dimension_numbers = #tpu.dot_dimension_numbers<[1], [1], [0], [0], [0, 0, 1, 0], [], []>} : vector<8x4xf32>, vector<8x4xf32>, vector<8x8xf32> -> vector<8x8xf32>
    %48 = arith.addf %46, %47 : vector<8x8xf32>
    %49 = arith.addf %48, %3 : vector<8x8xf32>
    %cst_25 = arith.constant dense<0xFF800000> : vector<8xf32>
    %50 = vector.multi_reduction <maximumf>, %49, %cst_25 [1] : vector<8x8xf32> to vector<8xf32>
    %51 = vector.shape_cast %50 : vector<8xf32> to vector<8x1xf32>
    %52 = vector.broadcast %51 : vector<8x1xf32> to vector<8x8xf32>
    %53 = arith.subf %49, %52 : vector<8x8xf32>
    %54 = math.exp %53 : vector<8x8xf32>
    %cst_26 = arith.constant dense<0.000000e+00> : vector<8xf32>
    %55 = vector.multi_reduction <add>, %54, %cst_26 [1] : vector<8x8xf32> to vector<8xf32>
    %56 = vector.shape_cast %55 : vector<8xf32> to vector<8x1xf32>
    %57 = tpu.reciprocal %56 {approx = true} : vector<8x1xf32> -> vector<8x1xf32>
    %58 = vector.broadcast %57 : vector<8x1xf32> to vector<8x8xf32>
    %59 = arith.mulf %54, %58 : vector<8x8xf32>
    %cst_27 = arith.constant dense<0.000000e+00> : vector<8x8xf32>
    %60 = tpu.matmul %59, %23, %cst_27 {dimension_numbers = #tpu.dot_dimension_numbers<[1], [0], [0], [1], [0, 0, 1, 1], [], []>} : vector<8x8xf32>, vector<8x8xf32>, vector<8x8xf32> -> vector<8x8xf32>
    %61 = vector.extract_strided_slice %4 {offsets = [8, 0], sizes = [8, 32], strides = [1, 1]} : vector<32x32xf32> to vector<8x32xf32>
    %cst_28 = arith.constant dense<0.000000e+00> : vector<8x32xf32>
    %62 = tpu.matmul %60, %61, %cst_28 {dimension_numbers = #tpu.dot_dimension_numbers<[1], [0], [0], [1], [0, 0, 1, 1], [], []>} : vector<8x8xf32>, vector<8x32xf32>, vector<8x32xf32> -> vector<8x32xf32>
    %63 = arith.addf %43, %62 : vector<8x32xf32>
    %64 = vector.extract_strided_slice %19 {offsets = [0, 36], sizes = [8, 4], strides = [1, 1]} : vector<8x48xf32> to vector<8x4xf32>
    %65 = vector.extract_strided_slice %19 {offsets = [0, 44], sizes = [8, 4], strides = [1, 1]} : vector<8x48xf32> to vector<8x4xf32>
    %66 = vector.extract_strided_slice %6 {offsets = [0, 56], sizes = [8, 8], strides = [1, 1]} : vector<8x64xf32> to vector<8x8xf32>
    %67 = vector.extract_strided_slice %19 {offsets = [0, 8], sizes = [8, 4], strides = [1, 1]} : vector<8x48xf32> to vector<8x4xf32>
    %68 = vector.extract_strided_slice %19 {offsets = [0, 24], sizes = [8, 4], strides = [1, 1]} : vector<8x48xf32> to vector<8x4xf32>
    %cst_29 = arith.constant dense<0.000000e+00> : vector<8x8xf32>
    %69 = tpu.matmul %67, %64, %cst_29 {dimension_numbers = #tpu.dot_dimension_numbers<[1], [1], [0], [0], [0, 0, 1, 0], [], []>} : vector<8x4xf32>, vector<8x4xf32>, vector<8x8xf32> -> vector<8x8xf32>
    %cst_30 = arith.constant dense<0.000000e+00> : vector<8x8xf32>
    %70 = tpu.matmul %68, %65, %cst_30 {dimension_numbers = #tpu.dot_dimension_numbers<[1], [1], [0], [0], [0, 0, 1, 0], [], []>} : vector<8x4xf32>, vector<8x4xf32>, vector<8x8xf32> -> vector<8x8xf32>
    %71 = arith.addf %69, %70 : vector<8x8xf32>
    %72 = arith.addf %71, %3 : vector<8x8xf32>
    %cst_31 = arith.constant dense<0xFF800000> : vector<8xf32>
    %73 = vector.multi_reduction <maximumf>, %72, %cst_31 [1] : vector<8x8xf32> to vector<8xf32>
    %74 = vector.shape_cast %73 : vector<8xf32> to vector<8x1xf32>
    %75 = vector.broadcast %74 : vector<8x1xf32> to vector<8x8xf32>
    %76 = arith.subf %72, %75 : vector<8x8xf32>
    %77 = math.exp %76 : vector<8x8xf32>
    %cst_32 = arith.constant dense<0.000000e+00> : vector<8xf32>
    %78 = vector.multi_reduction <add>, %77, %cst_32 [1] : vector<8x8xf32> to vector<8xf32>
    %79 = vector.shape_cast %78 : vector<8xf32> to vector<8x1xf32>
    %80 = tpu.reciprocal %79 {approx = true} : vector<8x1xf32> -> vector<8x1xf32>
    %81 = vector.broadcast %80 : vector<8x1xf32> to vector<8x8xf32>
    %82 = arith.mulf %77, %81 : vector<8x8xf32>
    %cst_33 = arith.constant dense<0.000000e+00> : vector<8x8xf32>
    %83 = tpu.matmul %82, %66, %cst_33 {dimension_numbers = #tpu.dot_dimension_numbers<[1], [0], [0], [1], [0, 0, 1, 1], [], []>} : vector<8x8xf32>, vector<8x8xf32>, vector<8x8xf32> -> vector<8x8xf32>
    %84 = vector.extract_strided_slice %4 {offsets = [16, 0], sizes = [8, 32], strides = [1, 1]} : vector<32x32xf32> to vector<8x32xf32>
    %cst_34 = arith.constant dense<0.000000e+00> : vector<8x32xf32>
    %85 = tpu.matmul %83, %84, %cst_34 {dimension_numbers = #tpu.dot_dimension_numbers<[1], [0], [0], [1], [0, 0, 1, 1], [], []>} : vector<8x8xf32>, vector<8x32xf32>, vector<8x32xf32> -> vector<8x32xf32>
    %86 = arith.addf %63, %85 : vector<8x32xf32>
    %87 = vector.extract_strided_slice %19 {offsets = [0, 12], sizes = [8, 4], strides = [1, 1]} : vector<8x48xf32> to vector<8x4xf32>
    %88 = vector.extract_strided_slice %19 {offsets = [0, 28], sizes = [8, 4], strides = [1, 1]} : vector<8x48xf32> to vector<8x4xf32>
    %cst_35 = arith.constant dense<0.000000e+00> : vector<8x8xf32>
    %89 = tpu.matmul %87, %64, %cst_35 {dimension_numbers = #tpu.dot_dimension_numbers<[1], [1], [0], [0], [0, 0, 1, 0], [], []>} : vector<8x4xf32>, vector<8x4xf32>, vector<8x8xf32> -> vector<8x8xf32>
    %cst_36 = arith.constant dense<0.000000e+00> : vector<8x8xf32>
    %90 = tpu.matmul %88, %65, %cst_36 {dimension_numbers = #tpu.dot_dimension_numbers<[1], [1], [0], [0], [0, 0, 1, 0], [], []>} : vector<8x4xf32>, vector<8x4xf32>, vector<8x8xf32> -> vector<8x8xf32>
    %91 = arith.addf %89, %90 : vector<8x8xf32>
    %92 = arith.addf %91, %3 : vector<8x8xf32>
    %cst_37 = arith.constant dense<0xFF800000> : vector<8xf32>
    %93 = vector.multi_reduction <maximumf>, %92, %cst_37 [1] : vector<8x8xf32> to vector<8xf32>
    %94 = vector.shape_cast %93 : vector<8xf32> to vector<8x1xf32>
    %95 = vector.broadcast %94 : vector<8x1xf32> to vector<8x8xf32>
    %96 = arith.subf %92, %95 : vector<8x8xf32>
    %97 = math.exp %96 : vector<8x8xf32>
    %cst_38 = arith.constant dense<0.000000e+00> : vector<8xf32>
    %98 = vector.multi_reduction <add>, %97, %cst_38 [1] : vector<8x8xf32> to vector<8xf32>
    %99 = vector.shape_cast %98 : vector<8xf32> to vector<8x1xf32>
    %100 = tpu.reciprocal %99 {approx = true} : vector<8x1xf32> -> vector<8x1xf32>
    %101 = vector.broadcast %100 : vector<8x1xf32> to vector<8x8xf32>
    %102 = arith.mulf %97, %101 : vector<8x8xf32>
    %cst_39 = arith.constant dense<0.000000e+00> : vector<8x8xf32>
    %103 = tpu.matmul %102, %66, %cst_39 {dimension_numbers = #tpu.dot_dimension_numbers<[1], [0], [0], [1], [0, 0, 1, 1], [], []>} : vector<8x8xf32>, vector<8x8xf32>, vector<8x8xf32> -> vector<8x8xf32>
    %104 = vector.extract_strided_slice %4 {offsets = [24, 0], sizes = [8, 32], strides = [1, 1]} : vector<32x32xf32> to vector<8x32xf32>
    %cst_40 = arith.constant dense<0.000000e+00> : vector<8x32xf32>
    %105 = tpu.matmul %103, %104, %cst_40 {dimension_numbers = #tpu.dot_dimension_numbers<[1], [0], [0], [1], [0, 0, 1, 1], [], []>} : vector<8x8xf32>, vector<8x32xf32>, vector<8x32xf32> -> vector<8x32xf32>
    %106 = arith.addf %86, %105 : vector<8x32xf32>
    %c0_41 = arith.constant 0 : index
    %c0_42 = arith.constant 0 : index
    %c0_43 = arith.constant 0 : index
    %107 = vector.load %arg7[%c0_41, %c0_42, %c0_43] : memref<1x8x32xf32, #tpu.memory_space<vmem>>, vector<1x8x32xf32>
    %108 = vector.shape_cast %107 : vector<1x8x32xf32> to vector<8x32xf32>
    %109 = vector.shape_cast %106 : vector<8x32xf32> to vector<1x8x32xf32>
    tpu.vector_store %arg7[%c0_41, %c0_42, %c0_43], %109 {strides = array<i32>} : memref<1x8x32xf32, #tpu.memory_space<vmem>>, vector<1x8x32xf32>,
    return
  }
  func.func @transform_0(%arg0: i32) -> (i32, i32, i32) {
    %c0_i32 = arith.constant 0 : i32
    %c0_i32_0 = arith.constant 0 : i32
    %c0_i32_1 = arith.constant 0 : i32
    return %arg0, %c0_i32, %c0_i32_0 : i32, i32, i32
  }
  func.func @transform_1(%arg0: i32) -> (i32, i32) {
    %c0_i32 = arith.constant 0 : i32
    %c0_i32_0 = arith.constant 0 : i32
    %c0_i32_1 = arith.constant 0 : i32
    return %c0_i32, %c0_i32_0 : i32, i32
  }
  func.func @transform_2(%arg0: i32) -> (i32, i32) {
    %c0_i32 = arith.constant 0 : i32
    %c0_i32_0 = arith.constant 0 : i32
    %c0_i32_1 = arith.constant 0 : i32
    return %c0_i32, %c0_i32_0 : i32, i32
  }
  func.func @transform_3(%arg0: i32) -> (i32, i32, i32) {
    %c0_i32 = arith.constant 0 : i32
    %c0_i32_0 = arith.constant 0 : i32
    %c0_i32_1 = arith.constant 0 : i32
    return %arg0, %c0_i32, %c0_i32_0 : i32, i32, i32
  }
  func.func @transform_4(%arg0: i32) -> (i32, i32, i32) {
    %c0_i32 = arith.constant 0 : i32
    %c0_i32_0 = arith.constant 0 : i32
    %c0_i32_1 = arith.constant 0 : i32
    return %arg0, %c0_i32, %c0_i32_0 : i32, i32, i32
  }
  func.func @transform_5(%arg0: i32) -> (i32, i32, i32, i32) {
    %c0_i32 = arith.constant 0 : i32
    %c0_i32_0 = arith.constant 0 : i32
    %c0_i32_1 = arith.constant 0 : i32
    %c0_i32_2 = arith.constant 0 : i32
    %c0_i32_3 = arith.constant 0 : i32
    return %c0_i32, %c0_i32_0, %c0_i32_1, %c0_i32_2 : i32, i32, i32, i32
  }
  func.func @transform_6(%arg0: i32) -> (i32, i32, i32) {
    %c0_i32 = arith.constant 0 : i32
    %c0_i32_0 = arith.constant 0 : i32
    %c0_i32_1 = arith.constant 0 : i32
    return %arg0, %c0_i32, %c0_i32_0 : i32, i32, i32
  }
}

</mosaic_0001>

<bundles_post_ra>
// kernel: llama_self_attention.1
= control target key start
LH: loop header
LB: loop body
LE: loop exit
PB: predicated region body
PF: predicated region fallthrough
CT: control target
= control target key end

     0   :  { %11 = vsyncpa [#allocation3], 0  ;;  %s1292_s0 = inlined_call_operand.vmem [shape: f32[2,8,32], index: 0, kind: input, shape index: {}]   ;;  %s1293_s1 = inlined_call_operand.vmem [shape: f32[32,64], index: 1, kind: input, shape index: {}]   ;;  %s1294_s2 = inlined_call_operand.vmem [shape: f32[32,32], index: 2, kind: input, shape index: {}]   ;;  %s1295_s3 = inlined_call_operand.vmem [shape: f32[2,8,48], index: 3, kind: input, shape index: {}]   ;;  %s1296_s4 = inlined_call_operand.vmem [shape: f32[2,8,48], index: 4, kind: input, shape index: {}]   ;;  %s1297_s5 = inlined_call_operand.vmem [shape: f32[1,1,8,8], index: 5, kind: input, shape index: {}]   ;;  %s1298_s6 = inlined_call_operand.hbm [shape: f32[2,8,32], index: 6, kind: output, shape index: {}]  }
   0x1   :  { %13 = vsyncpa [#allocation3 + $0x1], 0  ;;  %s1108_s21 = smov 0   ;;  %s1110_s22 = smov 0  }
   0x2   :  { %s1112_s23 = smov 0   ;;  %s1114_s24 = smov 0  }
   0x3 LB: > { %s1129_s25 = sadd.s32 4294967295, %s1056_s24   ;;  %s887_s26 = sadd.s32 4294967294, %s1056_s24   ;;  %s1056_s24 = sphi %s1114_s24, %s1304_s24   ;;  %s1052_s23 = sphi %s1112_s23, %s1303_s23   ;;  %s1048_s22 = sphi %s1110_s22, %s1302_s22   ;;  %s1044_s21 = sphi %s1108_s21, %s1301_s21  }
   0x4   : > { %s1133_s27 = sadd.s32 1, %s1056_s24   ;;  %s167_s28 = sadd.s32 1, %s1052_s23 }
   0x5   : > { %s164_s29 = ssub.s32 %s1056_s24, %s1133_s27  ;;  %p177_p0 = scmp.ne.s32.totalorder %s1052_s23, %s1048_s22 }
   0x6   : > { %p165_p1 = scmp.eq.s32.totalorder %s164_s29, 0  ;;  %p178_p2 = scmp.eq.s32.totalorder %s1129_s25, 1 }
   0x7   : > { %p183_p3 = scmp.ne.s32.totalorder %s1048_s22, %s1044_s21  ;;  %p184_p4 = scmp.eq.s32.totalorder %s887_s26, 1 }
   0x8   : > { %s1144_s30 = scalar_select %p165_p1, %s1052_s23, %s167_s28  }
   0x9   : > { %p1146_p5 = por %p178_p2, %p177_p0  ;;  %p1150_p6 = por %p184_p4, %p183_p3 }
   0xa   : > { %p890_p7 = scmp.ge.s32.totalorder %s1056_s24, 1  ;;  %p232_p8 = scmp.lt.s32.totalorder %s1056_s24, 3 }
   0xc   : > { %p233_p9 = pnand %p890_p7, %p232_p8 }
   0xd   : > { %p269_p10 = scmp.lt.s32.totalorder (!%p233_p9), %s1129_s25, 1  ;;  %s1058_s28 = smov (!%p233_p9), 120  }
   0xe   : > { %236 = sbr.rel (%p233_p9) target bundleno = 1849 (0x739), region = 44  ;;  %s1059_s29 = smov (!%p233_p9), 112  }
   0xf   : > { %s1060_s9 = smov (!%p233_p9), 8   ;;  %s1061_s10 = smov (!%p233_p9), 16  }
  0x10   : > { %s1062_s17 = smov (!%p233_p9), 96   ;;  %s1064_s19 = smov (!%p233_p9), 88  }
  0x11   : > { %s1065_s20 = smov (!%p233_p9), 108   ;;  %s1068_s11 = smov (!%p233_p9), 84  }
  0x12   : > { %s1069_s12 = smov (!%p233_p9), 100  }
  0x13   : > { %v290_v0 = vld [vmem:[%s1293_s1 + $0x18] sm:$0xff]  ;;  %v289_v1 = vld [vmem:[%s1293_s1 + $0x10] sm:$0xff]  ;;  %v288_v2 = vld [vmem:[%s1293_s1 + $0x8] sm:$0xff]  ;;  %s270_s15 = scalar_select %p269_p10, %s1129_s25, 1  ;;  %vm291_vm0 = vcmask 261120   ;;  %vm328_vm1 = vcmask 130048  }
  0x14   : > { %307 = vmatpush.msra.mxu0 %v290_v0  ;;  %v287_v3 = vld [vmem:[%s1293_s1] sm:$0xff]  ;;  %vm331_vm2 = vcmask 326656   ;;  %vm343_vm3 = vcmask 31744   ;;  %vm395_vm4 = vcmask 64512   ;;  %v284_v59 = vld [vmem:[%s1294_s2 + $0x8] sm:$0xff] }
  0x15   : > { %s892_s18 = sshll.u32 %s270_s15, 3  ;;  %v1208_v26 = vld [vmem:[%s1297_s5] sm:$0xff]  ;;  %s1071_s15 = smov 104  }
  0x16   : > { %308 = vmatpush.msra.mxu0 %v289_v1  ;;  %s272_s26 = scalar_lea.vmem %s1292_s0, %s892_s18  ;;  %s276_s13 = scalar_lea.vmem %s1295_s3, %s892_s18  ;;  %v283_v40 = vld [vmem:[%s1294_s2] sm:$0xff] }
  0x17   : > { %v281_v4 = vld [vmem:[%s272_s26] sm:$0xff]  ;;  %s280_s16 = scalar_lea.vmem %s1296_s4, %s892_s18  ;;  %s1063_s18 = smov 80  }
  0x18   : > { %309 = vmatpush.msra.mxu0 %v288_v2  ;;  %v333_v9 = vld [vmem:[%s276_s13] sm:$0xff]  ;;  %s1066_s26 = smov 124  }
  0x19   : > { %v335_v10 = vld [vmem:[%s280_s16] sm:$0xff] }
  0x1a   : > { %310 = vmatpush.msra.mxu0 %v287_v3 }
  0x1b   : > { %895 = vmatmul.msk.f32.vlgmr.msra.gmra.mxu0 %vm291_vm0, %v281_v4 }
  0x1c   : > { %534 = vmatpush.msrb.mxu0 %v284_v59 }
  0x98   : > { %v1174_v5 = vpop.f32.mrf.mxu0 }
  0x99   : > { %322 = vrot.lane.b32.xlu1 %v1174_v5, %s1058_s28  ;;  %316 = vrot.lane.b32.xlu0 %v1174_v5, %s1059_s29  ;;  %v334_v15 = vmul.f32 %v333_v9, %v1174_v5 }
  0xa1   : > { %325 = vrot.lane.b32.xlu1 %v1174_v5, %s1060_s9  ;;  %319 = vrot.lane.b32.xlu0 %v1174_v5, %s1061_s10  ;;  %s1067_s10 = smov 92   ;;  %s266_s9 = sand.u32 1, %s1048_s22  }
 0x10b   : > { %v323_v6 = vpop.permute.xlu1 %322  ;;  %v317_v7 = vpop.permute.xlu0 %316 }
 0x113   : > { %v320_v8 = vpop.permute.xlu0 %319  ;;  %v326_v12 = vpop.permute.xlu1 %325 }
 0x114   : > { %v329_v11 = vsel %vm328_vm1, %v317_v7, %v320_v8 }
 0x115   : > { %v330_v13 = vsel %vm291_vm0, %v329_v11, %v323_v6 }
 0x116   : > { %v332_v14 = vsel %vm331_vm2, %v330_v13, %v326_v12 }
 0x117   : > { %v336_v16 = vmul.f32 %v335_v10, %v332_v14 }
 0x119   : > { %v1189_v17 = vadd.f32 %v336_v16, %v334_v15 }
 0x11b   : > { %339 = vrot.lane.b32.xlu0 %v1189_v17, %s1059_s29  ;;  %368 = vrot.lane.b32.xlu2 %v1189_v17, %s1062_s17  ;;  %s789_s17 = scalar_lea.sflag [#allocation3], %s266_s9 }
 0x123   : > { %407 = vrot.lane.b32.xlu0 %v1174_v5, %s1063_s18  ;;  %341 = vrot.lane.b32.xlu2 %v1189_v17, %s1064_s19  ;;  %s1072_s18 = smov 72  }
 0x12b   : > { %433 = vrot.lane.b32.xlu0 %v1189_v17, %s1065_s20 }
 0x133   : > { %457 = vrot.lane.b32.xlu0 %v1189_v17, %s1066_s26  ;;  %s1014_s26 = scalar_lea.hbm %s1298_s6, 16 }
 0x175   : > { %v369_v18 = vpop.permute.xlu2 %368 }
 0x176   : > { %898 = vmatpush.xpose.msk.msra.mxu2 %vm343_vm3, %v369_v18 }
 0x179   : > { %899 = vmatmul.msk.f32.vlgmr.msra.gmra.mxu2 %vm343_vm3, %v1189_v17 }
 0x17d   : > { %v342_v19 = vpop.permute.xlu2 %341 }
 0x17e   : > { %896 = vmatpush.xpose.msk.msra.mxu1 %vm343_vm3, %v342_v19 }
 0x182   : > { %903 = vmatpush.xpose.msk.msrb.mxu1 %vm343_vm3, %v369_v18 }
 0x18d   : > { %v340_v20 = vpop.permute.xlu0 %339 }
 0x18e   : > { %897 = vmatmul.msk.f32.vlgmr.msra.gmra.mxu1 %vm343_vm3, %v340_v20 }
 0x195   : > { %v408_v21 = vpop.permute.xlu0 %407 }
 0x196   : > { %428 = vmatpush.msra.mxu3 %v408_v21  ;;  %511 = vmatpush.msrb.mxu2 %v408_v21 }
 0x198   : > { %901 = vmatpush.xpose.msk.msrb.mxu3 %vm343_vm3, %v342_v19 }
 0x19d   : > { %v434_v22 = vpop.permute.xlu0 %433 }
 0x1a5   : > { %v458_v23 = vpop.permute.xlu0 %457 }
 0x1a6   : > { %904 = vmatmul.msk.f32.vlgmr.msrb.gmra.mxu1 %vm343_vm3, %v458_v23 }
 0x1fc   : > { %v391_v24 = vpop.f32.mrf.mxu2 }
 0x20b   : > { %v365_v25 = vpop.f32.mrf.mxu1 }
 0x20c   : > { %v392_v27 = vadd.f32 %v391_v24, %v365_v25  ;;  %v286_v25 = vld [vmem:[%s1294_s2 + $0x18] sm:$0xff] }
 0x20e   : > { %v394_v28 = vadd.f32 %v392_v27, %v1208_v26 }
 0x210   : > { %v396_v29 = vsel %vm395_vm4, %v394_v28, -inf }
 0x211   : > { %397 = vmax.xlane.f32.xlu1 %v396_v29 }
 0x223   : > { %v478_v42 = vpop.f32.mrf.mxu1 }
 0x22a   : > { %592 = vrot.lane.b32.xlu1 %v1189_v17, %s1067_s10  ;;  %s891_s10 = sshll.u32 %s266_s9, 3 }
 0x232   : > { %564 = vrot.lane.b32.xlu1 %v1189_v17, %s1068_s11  ;;  %s921_s11 = sshll.u32 %s1129_s25, 3 }
 0x233   : > { %s799_s14 = scalar_lea.hbm %s1298_s6, %s921_s11 }
 0x234   : > { %s803_s16 = sshll.u32 %s799_s14, 4  ;;  %s804_s16 = int_to_ptr.hbm [resolvable:$true] %s803_s16 }
 0x23a   : > { %680 = vrot.lane.b32.xlu1 %v1189_v17, %s1069_s12 }
 0x284   : > { %v398_v30 = vpop.xlane.xlu1 %397 }
 0x285   : > { %v399_v31 = vsub.f32 %v394_v28, %v398_v30 }
 0x287   : > { %v400_v32 = vmul.f32 1.442695, %v399_v31 }
 0x289   : > { %978 = vpow2.f32 %v400_v32 }
 0x28f   : > { %v979_v33 = vpop.eup %978 }
 0x290   : > { %v402_v34 = vsel %vm395_vm4, %v979_v33, 0.0 }
 0x291   : > { %403 = vadd.xlane.f32.xlu2 %v402_v34 }
 0x29c   : > { %v593_v35 = vpop.permute.xlu1 %592 }
 0x29d   : > { %910 = vmatpush.xpose.msk.msra.mxu2 %vm343_vm3, %v593_v35 }
 0x2a4   : > { %v565_v36 = vpop.permute.xlu1 %564 }
 0x2a5   : > { %908 = vmatpush.xpose.msk.msra.mxu1 %vm343_vm3, %v565_v36 }
 0x2a9   : > { %914 = vmatpush.xpose.msk.msrb.mxu1 %vm343_vm3, %v565_v36  ;;  %590 = vrot.lane.b32.xlu2 %v1189_v17, %s1058_s28  ;;  %s1070_s28 = smov 116  }
 0x2ac   : > { %v681_v57 = vpop.permute.xlu1 %680 }
 0x304   : > { %v404_v37 = vpop.xlane.xlu2 %403 }
 0x305   : > { %980 = vrcp.f32 %v404_v37 }
 0x30b   : > { %v981_v38 = vpop.eup %980 }
 0x30c   : > { %v406_v39 = vmul.f32 %v981_v38, %v979_v33  ;;  %v591_v52 = vpop.permute.xlu2 %590 }
 0x30e   : > { %900 = vmatmul.msk.f32.vlgmr.msra.gmra.mxu3 %vm395_vm4, %v406_v39 }
 0x30f   : > { %557 = vmatpush.msra.mxu3 %v283_v40 }
 0x316   : > { %902 = vmatmul.msk.f32.vlgmr.msrb.gmra.mxu3 %vm343_vm3, %v434_v22 }
 0x391   : > { %v430_v41 = vpop.f32.mrf.mxu3 }
 0x392   : > { %907 = vmatmul.msk.f32.vlgmr.msra.gmra.mxu3 %vm395_vm4, %v430_v41 }
 0x399   : > { %v454_v43 = vpop.f32.mrf.mxu3 }
 0x39a   : > { %v479_v44 = vadd.f32 %v478_v42, %v454_v43 }
 0x39c   : > { %v481_v45 = vadd.f32 %v479_v44, %v1208_v26 }
 0x39e   : > { %v482_v46 = vsel %vm395_vm4, %v481_v45, -inf }
 0x39f   : > { %483 = vmax.xlane.f32.xlu0 %v482_v46 }
 0x3b3   : > { %704 = vrot.lane.b32.xlu0 %v1189_v17, %s1070_s28  ;;  %s268_s28 = scalar_lea.vmem [#allocation2], %s891_s10 }
 0x412   : > { %v484_v47 = vpop.xlane.xlu0 %483 }
 0x413   : > { %v485_v48 = vsub.f32 %v481_v45, %v484_v47 }
 0x415   : > { %v486_v49 = vmul.f32 1.442695, %v485_v48  ;;  %v559_v29 = vpop.f32.mrf.mxu3 }
 0x417   : > { %982 = vpow2.f32 %v486_v49 }
 0x41d   : > { %v983_v50 = vpop.eup %982 }
 0x41e   : > { %v488_v51 = vsel %vm395_vm4, %v983_v50, 0.0 }
 0x41f   : > { %489 = vadd.xlane.f32.xlu2 %v488_v51 }
 0x425   : > { %v705_v58 = vpop.permute.xlu0 %704 }
 0x437   : > { %562 = vrot.lane.b32.xlu2 %v1189_v17, %s1071_s15  ;;  %s801_s15 = sshll.u32 %s268_s28, 4  ;;  %s802_s15 = int_to_ptr.vmem [resolvable:$true] %s801_s15 }
 0x492   : > { %v490_v53 = vpop.xlane.xlu2 %489 }
 0x493   : > { %984 = vrcp.f32 %v490_v53 }
 0x499   : > { %v985_v54 = vpop.eup %984 }
 0x49a   : > { %v563_v55 = vpop.permute.xlu2 %562  ;;  %v492_v56 = vmul.f32 %v985_v54, %v983_v50 }
 0x49b   : > { %909 = vmatmul.msk.f32.vlgmr.msra.gmra.mxu1 %vm343_vm3, %v563_v55 }
 0x49c   : > { %905 = vmatmul.msk.f32.vlgmr.msrb.gmra.mxu2 %vm395_vm4, %v492_v56 }
 0x49d   : > { %916 = vmatpush.xpose.msk.msrb.mxu2 %vm343_vm3, %v593_v35 }
 0x4a3   : > { %915 = vmatmul.msk.f32.vlgmr.msrb.gmra.mxu1 %vm343_vm3, %v681_v57 }
 0x4a4   : > { %911 = vmatmul.msk.f32.vlgmr.msra.gmra.mxu2 %vm343_vm3, %v591_v52 }
 0x4ac   : > { %917 = vmatmul.msk.f32.vlgmr.msrb.gmra.mxu2 %vm343_vm3, %v705_v58 }
 0x518   : > { %v587_v61 = vpop.f32.mrf.mxu1 }
 0x51f   : > { %v513_v60 = vpop.f32.mrf.mxu2 }
 0x520   : > { %906 = vmatmul.msk.f32.vlgmr.msrb.gmra.mxu0 %vm395_vm4, %v513_v60  ;;  %v701_v2 = vpop.f32.mrf.mxu1 }
 0x527   : > { %v615_v62 = vpop.f32.mrf.mxu2 }
 0x528   : > { %v616_v63 = vadd.f32 %v615_v62, %v587_v61 }
 0x52a   : > { %v618_v0 = vadd.f32 %v616_v63, %v1208_v26 }
 0x52c   : > { %v619_v1 = vsel %vm395_vm4, %v618_v0, -inf }
 0x52d   : > { %620 = vmax.xlane.f32.xlu2 %v619_v1 }
 0x52f   : > { %v725_v3 = vpop.f32.mrf.mxu2 }
 0x530   : > { %v726_v4 = vadd.f32 %v725_v3, %v701_v2 }
 0x532   : > { %v728_v6 = vadd.f32 %v726_v4, %v1208_v26 }
 0x534   : > { %v729_v7 = vsel %vm395_vm4, %v728_v6, -inf }
 0x535   : > { %730 = vmax.xlane.f32.xlu1 %v729_v7 }
 0x54e   : > { %630 = vrot.lane.b32.xlu1 %v1174_v5, %s1072_s18  ;;  %v285_v5 = vld [vmem:[%s1294_s2 + $0x10] sm:$0xff]  ;;  %s1008_s18 = sshra.s32 %s804_s16, 4  ;;  %s1009_s18 = int_to_ptr.hbm [resolvable:$true] %s1008_s18 }
 0x54f   : > { %674 = vmatpush.msrb.mxu3 %v285_v5  ;;  %s1010_s25 = scalar_lea.hbm %s1009_s18, 8  ;;  %p1015_p0 = scmp.lt.s32.totalorder %s1009_s18, %s1298_s6 }
 0x550   : > { %p1011_p11 = scmp.ne.s32.totalorder %s1009_s18, %s1010_s25  ;;  %p1016_p1 = scmp.lt.s32.totalorder %s1014_s26, %s1010_s25 }
 0x551   : > { %781 = vmatpush.msra.mxu3 %v286_v25 }
 0x552   : > { %p1012_p12 = pnand %p1011_p11, %p1146_p5  ;;  %p1017_p2 = por %p1016_p1, %p1015_p0 }
 0x554   : > { %p1013_p13 = pneg %p1012_p12 }
 0x556   : > { %p1018_p3 = pnand %p1017_p2, %p1013_p13 }
 0x59d   : > { %v536_v26 = vpop.f32.mrf.mxu0 }
 0x59e   : > { %v560_v31 = vadd.f32 %v559_v29, %v536_v26 }
 0x5a0   : > { %v621_v8 = vpop.xlane.xlu2 %620 }
 0x5a1   : > { %v622_v9 = vsub.f32 %v618_v0, %v621_v8 }
 0x5a3   : > { %v623_v10 = vmul.f32 1.442695, %v622_v9 }
 0x5a5   : > { %986 = vpow2.f32 %v623_v10 }
 0x5a8   : > { %v731_v11 = vpop.xlane.xlu1 %730 }
 0x5a9   : > { %v732_v12 = vsub.f32 %v728_v6, %v731_v11 }
 0x5ab   : > { %v987_v13 = vpop.eup %986  ;;  %v733_v14 = vmul.f32 1.442695, %v732_v12 }
 0x5ac   : > { %v625_v15 = vsel %vm395_vm4, %v987_v13, 0.0 }
 0x5ad   : > { %988 = vpow2.f32 %v733_v14  ;;  %626 = vadd.xlane.f32.xlu0 %v625_v15 }
 0x5b3   : > { %v989_v16 = vpop.eup %988 }
 0x5b4   : > { %v735_v17 = vsel %vm395_vm4, %v989_v16, 0.0 }
 0x5b5   : > { %736 = vadd.xlane.f32.xlu2 %v735_v17 }
 0x5c0   : > { %v631_v18 = vpop.permute.xlu1 %630 }
 0x5c1   : > { %651 = vmatpush.msra.mxu0 %v631_v18 }
 0x5c3   : > { %758 = vmatpush.msrb.mxu0 %v631_v18 }
 0x620   : > { %v627_v19 = vpop.xlane.xlu0 %626 }
 0x621   : > { %990 = vrcp.f32 %v627_v19 }
 0x627   : > { %v991_v20 = vpop.eup %990 }
 0x628   : > { %v629_v21 = vmul.f32 %v991_v20, %v987_v13  ;;  %v737_v22 = vpop.xlane.xlu2 %736 }
 0x629   : > { %992 = vrcp.f32 %v737_v22 }
 0x62a   : > { %912 = vmatmul.msk.f32.vlgmr.msra.gmra.mxu0 %vm395_vm4, %v629_v21 }
 0x62f   : > { %v993_v23 = vpop.eup %992 }
 0x630   : > { %v739_v24 = vmul.f32 %v993_v23, %v989_v16 }
 0x632   : > { %918 = vmatmul.msk.f32.vlgmr.msrb.gmra.mxu0 %vm395_vm4, %v739_v24 }
 0x6a7   : > { %v653_v27 = vpop.f32.mrf.mxu0 }
 0x6a8   : > { %913 = vmatmul.msk.f32.vlgmr.msrb.gmra.mxu3 %vm395_vm4, %v653_v27 }
 0x6af   : > { %v760_v28 = vpop.f32.mrf.mxu0 }
 0x6b0   : > { %919 = vmatmul.msk.f32.vlgmr.msra.gmra.mxu3 %vm395_vm4, %v760_v28 }
 0x72b   : > { %v676_v30 = vpop.f32.mrf.mxu3 }
 0x72c   : > { %v679_v32 = vadd.f32 %v676_v30, %v560_v31 }
 0x733   : > { %v783_v33 = vpop.f32.mrf.mxu3 }
 0x734   : > { %v786_v34 = vadd.f32 %v783_v33, %v679_v32 }
 0x736   : > { %787 = vst.msk [vmem:[%s268_s28] sm:$0xff] %vm291_vm0, %v786_v34 }
 0x737   : > { %1021 = shalt.err (!%p1018_p3)
}
 0x738   : > { %924 = dma.vmem_to_hbm [thread:$0]  (%p1146_p5), %s802_s15, 128, %s804_s16, %s789_s17  }
 0x739 PF: > { %p930_p4 = scmp.ge.s32.totalorder %s1056_s24, 2  ;;  %s815_s9 = sand.u32 1, %s1044_s21  }
 0x73a   : > { %s816_s11 = scalar_lea.sflag [#allocation3], %s815_s9 }
 0x73b   : > { %p927_p7 = pnand %p930_p4, %p1150_p6 }
 0x73d   : > { %p928_p8 = pneg %p927_p7 }
 0x73f   : > { %1039 = dma.done.wait (%p928_p8), %s816_s11, 128  }
 0x740   : > { %1041 = vsyncadd (%p928_p8), %s816_s11, 4294967168  ;;  %p16_p9 = scmp.ge.s32.totalorder %s1133_s27, 4   ;;  %s1301_s21 = smov %s1048_s22 }
 0x741   : > { %s1302_s22 = smov %s1052_s23  ;;  %s1303_s23 = smov %s1144_s30 }
 0x742   : > { %s1304_s24 = smov %s1133_s27  ;;  %18 = sbr.rel (!%p16_p9) target bundleno = 3 (0x3), region = 85 }
 0x747   :  { %822 = vsyncpa [#allocation3], 1 }
 0x748   :  { %824 = vsyncpa [#allocation3 + $0x1], 1 }

</bundles_post_ra>
